<compile_context>
chip_gen: v7x
topology: tpu7x:2x2x1
jax: 0.10.0
libtpu: 0.0.40
codegen_flags: <defaults>
</compile_context>

<pallas_src>
import jax
import jax.numpy as jnp
from jax import lax
from jax.experimental import pallas as pl
from jax.experimental.pallas import tpu as pltpu

BN_EPS = 1e-5


def _residual_kernel(x_ref, w1_ref, w2_ref, p_ref, o_ref):
    x = x_ref[...]                                             # (B, nc) f32 (kept f32 for skip + stats)

    # ---- linear1: (B,K) @ (K,N), bf16 operands, f32 accumulation (MXU) ----
    h = jnp.dot(x.astype(jnp.bfloat16), w1_ref[...],
                preferred_element_type=jnp.float32)

    # ---- bn1 (training mode, biased variance) folded into one FMA, f32 ----
    mu1 = jnp.mean(h, axis=0, keepdims=True)                   # (1, nc)
    var1 = jnp.maximum(jnp.mean(h * h, axis=0, keepdims=True) - mu1 * mu1, 0.0)
    scale1 = p_ref[0:1, :] * lax.rsqrt(var1 + BN_EPS)          # g1 * rsqrt
    shift1 = p_ref[1:2, :] - mu1 * scale1                      # be1 - mu*scale
    h = jnp.maximum(h * scale1 + shift1, 0.0)                  # BN + ReLU

    # ---- linear2: bf16 operands, f32 accumulation (MXU) ----
    h2 = jnp.dot(h.astype(jnp.bfloat16), w2_ref[...],
                 preferred_element_type=jnp.float32)

    # ---- bn2 folded FMA + residual add + final ReLU ----
    mu2 = jnp.mean(h2, axis=0, keepdims=True)
    var2 = jnp.maximum(jnp.mean(h2 * h2, axis=0, keepdims=True) - mu2 * mu2, 0.0)
    scale2 = p_ref[2:3, :] * lax.rsqrt(var2 + BN_EPS)
    shift2 = p_ref[3:4, :] - mu2 * scale2
    o_ref[...] = jnp.maximum(x + h2 * scale2 + shift2, 0.0).astype(o_ref.dtype)


def residual_forward(x, w1, b1, w2, b2, g1, be1, g2, be2):
    """x: (B, nc) float32. Returns (B, nc) float32.

    b1/b2 are accepted for API parity with the PyTorch module but are not
    passed to the kernel: bias-before-training-mode-BN is a mathematical no-op.
    """
    del b1, b2
    B, nc = x.shape

    # Pre-transpose weights to (in, out) and cast to bf16 in the wrapper
    # (one-time / constant-folded): canonical (B,K)@(K,N) MXU layout, half
    # the weight DMA bytes and VMEM footprint.
    w1t = jnp.asarray(w1, jnp.float32).T.astype(jnp.bfloat16)
    w2t = jnp.asarray(w2, jnp.float32).T.astype(jnp.bfloat16)

    # Pack the four BN parameter vectors into one (4, nc) f32 array -> one DMA.
    bn_params = jnp.stack([g1, be1, g2, be2], axis=0).astype(jnp.float32)

    # Everything is VMEM-resident (no grid): size the scoped-VMEM limit from
    # the actual footprint so scaling nc doesn't trip the 16/32 MiB default.
    resident_bytes = (2 * nc * nc * 2          # two bf16 (nc, nc) weights
                      + 2 * B * nc * 4         # x + output, f32
                      + 4 * nc * 4)            # packed BN params
    vmem_limit = int(min(100 * 1024 * 1024,
                         max(32 * 1024 * 1024, 2 * resident_bytes + (8 << 20))))

    vspec = pl.BlockSpec(memory_space=pltpu.VMEM)
    return pl.pallas_call(
        _residual_kernel,
        out_shape=jax.ShapeDtypeStruct((B, nc), jnp.float32),
        in_specs=[vspec, vspec, vspec, vspec],
        out_specs=vspec,
        compiler_params=pltpu.CompilerParams(vmem_limit_bytes=vmem_limit),
    )(x.astype(jnp.float32), w1t, w2t, bn_params)


def _reference(x, w1, b1, w2, b2, g1, be1, g2, be2):
    """Pure-JAX f32 reference matching the PyTorch forward (training-mode BN),
    including the (mathematically redundant) linear biases."""
    def bn(h, g, be):
        mu = jnp.mean(h, axis=0, keepdims=True)
        var = jnp.mean((h - mu) ** 2, axis=0, keepdims=True)
        return g * (h - mu) / jnp.sqrt(var + BN_EPS) + be
    h = bn(x @ w1.T + b1, g1, be1)
    h = jax.nn.relu(h)
    h2 = bn(h @ w2.T + b2, g2, be2)
    return jax.nn.relu(x + h2)


if __name__ == "__main__":
    # nc chosen as a multiple of 128 so the feature axis is lane-dense;
    # B = 8 fills the sublanes of a single f32 vreg row-group (small demo —
    # throughput scales ~linearly with B up to the MXU height of 128/256).
    B, nc = 8, 128
    key = jax.random.PRNGKey(0)
    kx, kw1, kb1, kw2, kb2 = jax.random.split(key, 5)

    x = jax.random.normal(kx, (B, nc), dtype=jnp.float32)

    # Linear weights/biases random (PyTorch-style uniform init), BN affine
    # params at PyTorch defaults gamma=1, beta=0.
    bound = 1.0 / float(jnp.sqrt(jnp.float32(nc)))
    w1 = jax.random.uniform(kw1, (nc, nc), jnp.float32, -bound, bound)
    b1 = jax.random.uniform(kb1, (nc,), jnp.float32, -bound, bound)
    w2 = jax.random.uniform(kw2, (nc, nc), jnp.float32, -bound, bound)
    b2 = jax.random.uniform(kb2, (nc,), jnp.float32, -bound, bound)
    g1 = jnp.ones((nc,), jnp.float32)
    be1 = jnp.zeros((nc,), jnp.float32)
    g2 = jnp.ones((nc,), jnp.float32)
    be2 = jnp.zeros((nc,), jnp.float32)

    out = residual_forward(x, w1, b1, w2, b2, g1, be1, g2, be2)
    out = jax.block_until_ready(out)

    ref = _reference(x, w1, b1, w2, b2, g1, be1, g2, be2)
    assert out.shape == (B, nc)
    # bf16 matmul operands (f32 accumulation) -> relaxed tolerance vs f32 ref.
    assert jnp.allclose(out, ref, atol=5e-2, rtol=5e-2), "mismatch vs reference"

    print("KERNEL_OK")
</pallas_src>

<mosaic_0001>
module attributes {stable_mosaic.version = 11 : i64} {
  func.func @_residual_kernel(%arg0: memref<8x128xf32, #tpu.memory_space<vmem>>, %arg1: memref<128x128xbf16, #tpu.memory_space<vmem>>, %arg2: memref<128x128xbf16, #tpu.memory_space<vmem>>, %arg3: memref<4x128xf32, #tpu.memory_space<vmem>>, %arg4: memref<8x128xf32, #tpu.memory_space<vmem>>) attributes {dimension_semantics = [], scalar_prefetch = 0 : i64, scratch_operands = 0 : i64, tpu.core_type = #tpu.core_type<tc>} {
    %c0 = arith.constant 0 : index
    %c0_0 = arith.constant 0 : index
    %0 = vector.load %arg0[%c0, %c0_0] : memref<8x128xf32, #tpu.memory_space<vmem>>, vector<8x128xf32>
    %1 = arith.truncf %0 : vector<8x128xf32> to vector<8x128xbf16>
    %c0_1 = arith.constant 0 : index
    %c0_2 = arith.constant 0 : index
    %2 = vector.load %arg1[%c0_1, %c0_2] : memref<128x128xbf16, #tpu.memory_space<vmem>>, vector<128x128xbf16>
    %cst = arith.constant dense<0.000000e+00> : vector<8x128xf32>
    %3 = tpu.matmul %1, %2, %cst {dimension_numbers = #tpu.dot_dimension_numbers<[1], [0], [0], [1], [0, 0, 1, 1], [], []>} : vector<8x128xbf16>, vector<128x128xbf16>, vector<8x128xf32> -> vector<8x128xf32>
    %cst_3 = arith.constant dense<0.000000e+00> : vector<128xf32>
    %4 = vector.multi_reduction <add>, %3, %cst_3 [0] : vector<8x128xf32> to vector<128xf32>
    %5 = vector.shape_cast %4 : vector<128xf32> to vector<1x128xf32>
    %cst_4 = arith.constant 8.000000e+00 : f32
    %6 = vector.broadcast %cst_4 : f32 to vector<1x128xf32>
    %7 = arith.divf %5, %6 : vector<1x128xf32>
    %8 = arith.mulf %3, %3 : vector<8x128xf32>
    %cst_5 = arith.constant dense<0.000000e+00> : vector<128xf32>
    %9 = vector.multi_reduction <add>, %8, %cst_5 [0] : vector<8x128xf32> to vector<128xf32>
    %10 = vector.shape_cast %9 : vector<128xf32> to vector<1x128xf32>
    %cst_6 = arith.constant 8.000000e+00 : f32
    %11 = vector.broadcast %cst_6 : f32 to vector<1x128xf32>
    %12 = arith.divf %10, %11 : vector<1x128xf32>
    %13 = arith.mulf %7, %7 : vector<1x128xf32>
    %14 = arith.subf %12, %13 : vector<1x128xf32>
    %cst_7 = arith.constant 0.000000e+00 : f32
    %15 = vector.broadcast %cst_7 : f32 to vector<1x128xf32>
    %16 = arith.maximumf %14, %15 : vector<1x128xf32>
    %c0_8 = arith.constant 0 : index
    %c0_9 = arith.constant 0 : index
    %17 = vector.load %arg3[%c0_8, %c0_9] : memref<4x128xf32, #tpu.memory_space<vmem>>, vector<1x128xf32>
    %cst_10 = arith.constant 9.99999974E-6 : f32
    %18 = vector.broadcast %cst_10 : f32 to vector<1x128xf32>
    %19 = arith.addf %16, %18 : vector<1x128xf32>
    %20 = math.rsqrt %19 : vector<1x128xf32>
    %21 = arith.mulf %17, %20 : vector<1x128xf32>
    %c1 = arith.constant 1 : index
    %c0_11 = arith.constant 0 : index
    %22 = vector.load %arg3[%c1, %c0_11] : memref<4x128xf32, #tpu.memory_space<vmem>>, vector<1x128xf32>
    %23 = arith.mulf %7, %21 : vector<1x128xf32>
    %24 = arith.subf %22, %23 : vector<1x128xf32>
    %25 = vector.broadcast %21 : vector<1x128xf32> to vector<8x128xf32>
    %26 = arith.mulf %3, %25 : vector<8x128xf32>
    %27 = vector.broadcast %24 : vector<1x128xf32> to vector<8x128xf32>
    %28 = arith.addf %26, %27 : vector<8x128xf32>
    %cst_12 = arith.constant 0.000000e+00 : f32
    %29 = vector.broadcast %cst_12 : f32 to vector<8x128xf32>
    %30 = arith.maximumf %28, %29 : vector<8x128xf32>
    %31 = arith.truncf %30 : vector<8x128xf32> to vector<8x128xbf16>
    %c0_13 = arith.constant 0 : index
    %c0_14 = arith.constant 0 : index
    %32 = vector.load %arg2[%c0_13, %c0_14] : memref<128x128xbf16, #tpu.memory_space<vmem>>, vector<128x128xbf16>
    %cst_15 = arith.constant dense<0.000000e+00> : vector<8x128xf32>
    %33 = tpu.matmul %31, %32, %cst_15 {dimension_numbers = #tpu.dot_dimension_numbers<[1], [0], [0], [1], [0, 0, 1, 1], [], []>} : vector<8x128xbf16>, vector<128x128xbf16>, vector<8x128xf32> -> vector<8x128xf32>
    %cst_16 = arith.constant dense<0.000000e+00> : vector<128xf32>
    %34 = vector.multi_reduction <add>, %33, %cst_16 [0] : vector<8x128xf32> to vector<128xf32>
    %35 = vector.shape_cast %34 : vector<128xf32> to vector<1x128xf32>
    %cst_17 = arith.constant 8.000000e+00 : f32
    %36 = vector.broadcast %cst_17 : f32 to vector<1x128xf32>
    %37 = arith.divf %35, %36 : vector<1x128xf32>
    %38 = arith.mulf %33, %33 : vector<8x128xf32>
    %cst_18 = arith.constant dense<0.000000e+00> : vector<128xf32>
    %39 = vector.multi_reduction <add>, %38, %cst_18 [0] : vector<8x128xf32> to vector<128xf32>
    %40 = vector.shape_cast %39 : vector<128xf32> to vector<1x128xf32>
    %cst_19 = arith.constant 8.000000e+00 : f32
    %41 = vector.broadcast %cst_19 : f32 to vector<1x128xf32>
    %42 = arith.divf %40, %41 : vector<1x128xf32>
    %43 = arith.mulf %37, %37 : vector<1x128xf32>
    %44 = arith.subf %42, %43 : vector<1x128xf32>
    %cst_20 = arith.constant 0.000000e+00 : f32
    %45 = vector.broadcast %cst_20 : f32 to vector<1x128xf32>
    %46 = arith.maximumf %44, %45 : vector<1x128xf32>
    %c2 = arith.constant 2 : index
    %c0_21 = arith.constant 0 : index
    %47 = vector.load %arg3[%c2, %c0_21] : memref<4x128xf32, #tpu.memory_space<vmem>>, vector<1x128xf32>
    %cst_22 = arith.constant 9.99999974E-6 : f32
    %48 = vector.broadcast %cst_22 : f32 to vector<1x128xf32>
    %49 = arith.addf %46, %48 : vector<1x128xf32>
    %50 = math.rsqrt %49 : vector<1x128xf32>
    %51 = arith.mulf %47, %50 : vector<1x128xf32>
    %c3 = arith.constant 3 : index
    %c0_23 = arith.constant 0 : index
    %52 = vector.load %arg3[%c3, %c0_23] : memref<4x128xf32, #tpu.memory_space<vmem>>, vector<1x128xf32>
    %53 = arith.mulf %37, %51 : vector<1x128xf32>
    %54 = arith.subf %52, %53 : vector<1x128xf32>
    %55 = vector.broadcast %51 : vector<1x128xf32> to vector<8x128xf32>
    %56 = arith.mulf %33, %55 : vector<8x128xf32>
    %57 = arith.addf %0, %56 : vector<8x128xf32>
    %58 = vector.broadcast %54 : vector<1x128xf32> to vector<8x128xf32>
    %59 = arith.addf %57, %58 : vector<8x128xf32>
    %cst_24 = arith.constant 0.000000e+00 : f32
    %60 = vector.broadcast %cst_24 : f32 to vector<8x128xf32>
    %61 = arith.maximumf %59, %60 : vector<8x128xf32>
    %c0_25 = arith.constant 0 : index
    %c0_26 = arith.constant 0 : index
    %62 = vector.load %arg4[%c0_25, %c0_26] : memref<8x128xf32, #tpu.memory_space<vmem>>, vector<8x128xf32>
    tpu.vector_store %arg4[%c0_25, %c0_26], %61 {strides = array<i32>} : memref<8x128xf32, #tpu.memory_space<vmem>>, vector<8x128xf32>,
    return
  }
}

</mosaic_0001>

<bundles_post_ra>
// kernel: tpu_custom_call.1
= control target key start
LH: loop header
LB: loop body
LE: loop exit
PB: predicated region body
PF: predicated region fallthrough
CT: control target
= control target key end

     0   :  { %9 = vsyncpa [#allocation3], 0  ;;  %s660_s0 = inlined_call_operand.hbm [shape: f32[8,128], index: 0, kind: input, shape index: {}]   ;;  %s661_s1 = inlined_call_operand.hbm [shape: bf16[128,128], index: 1, kind: input, shape index: {}]   ;;  %s662_s2 = inlined_call_operand.hbm [shape: bf16[128,128], index: 2, kind: input, shape index: {}]   ;;  %s663_s3 = inlined_call_operand.vmem [shape: f32[4,128], index: 3, kind: input, shape index: {}]   ;;  %s664_s4 = inlined_call_operand.hbm [shape: f32[8,128], index: 4, kind: output, shape index: {}]  }
   0x1   :  { %10 = vsyncpa [#allocation6], 0 }
   0x2   :  { %11 = vsyncpa [#allocation4], 0  ;;  %s556_s15 = smov [#allocation5]   ;;  %s462_s19 = scalar_lea.hbm %s661_s1, 1024 }
   0x3   :  { %s27_s16 = sshll.u32 %s556_s15, 4  ;;  %p463_p0 = scmp.ne.s32.totalorder %s661_s1, %s462_s19  ;;  %s28_s16 = int_to_ptr.vmem [resolvable:$true] %s27_s16 }
   0x4   :  { %p466_p1 = scmp.lt.u32.totalorder %s462_s19, %s661_s1 }
   0x6   :  { %p468_p2 = pnand %p466_p1, %p463_p0 }
   0x8   :  { %471 = shalt.err (!%p468_p2)
}
   0x9   :  { %s472_s24 = scalar_lea.vmem %s28_s16, 1024  ;;  %p477_p4 = scmp.lt.s32.totalorder %s28_s16, %s28_s16 }
   0xa   :  { %p473_p3 = scmp.ne.s32.totalorder %s28_s16, %s472_s24  ;;  %p478_p5 = scmp.lt.s32.totalorder %s472_s24, %s472_s24 }
   0xc   :  { %p479_p6 = por %p478_p5, %p477_p4 }
   0xe   :  { %p480_p7 = pnand %p479_p6, %p473_p3 }
  0x10   :  { %483 = shalt.err (!%p480_p7)
}
  0x11   :  { %s557_s25 = smov 64   ;;  %s558_s26 = smov 4  }
  0x12   :  { %33 = dma.hbm_to_vmem [thread:$0]  %s661_s1, 1024, %s28_s16, [#allocation6], %s557_s25, %s557_s25, %s558_s26  }
  0x13   :  { %s559_s29 = smov [#allocation2]   ;;  %s560_s5 = smov [#allocation7]  }
  0x14   :  { %s18_s30 = sshll.u32 %s559_s29, 4  ;;  %s39_s6 = sshll.u32 %s560_s5, 4  ;;  %s19_s30 = int_to_ptr.vmem [resolvable:$true] %s18_s30  ;;  %s40_s6 = int_to_ptr.vmem [resolvable:$true] %s39_s6 }
  0x15   :  { %s484_s9 = scalar_lea.hbm %s660_s0, 128 }
  0x16   :  { %p485_p8 = scmp.ne.s32.totalorder %s660_s0, %s484_s9  ;;  %p488_p9 = scmp.lt.u32.totalorder %s484_s9, %s660_s0 }
  0x18   :  { %p490_p10 = pnand %p488_p9, %p485_p8 }
  0x1a   :  { %493 = shalt.err (!%p490_p10)
}
  0x1b   :  { %s494_s1 = scalar_lea.vmem %s19_s30, 128  ;;  %p499_p12 = scmp.lt.s32.totalorder %s19_s30, %s19_s30 }
  0x1c   :  { %p495_p11 = scmp.ne.s32.totalorder %s19_s30, %s494_s1  ;;  %p500_p13 = scmp.lt.s32.totalorder %s494_s1, %s494_s1 }
  0x1e   :  { %p501_p0 = por %p500_p13, %p499_p12 }
  0x20   :  { %p502_p1 = pnand %p501_p0, %p495_p11 }
  0x22   :  { %505 = shalt.err (!%p502_p1)
}
  0x23   :  { %21 = dma.hbm_to_vmem [thread:$0]  %s660_s0, 128, %s19_s30, [#allocation3]  }
  0x24   :  { %s506_s18 = scalar_lea.hbm %s662_s2, 1024 }
  0x25   :  { %p507_p2 = scmp.ne.s32.totalorder %s662_s2, %s506_s18  ;;  %p510_p3 = scmp.lt.u32.totalorder %s506_s18, %s662_s2 }
  0x27   :  { %p512_p4 = pnand %p510_p3, %p507_p2 }
  0x29   :  { %515 = shalt.err (!%p512_p4)
}
  0x2a   :  { %s516_s23 = scalar_lea.vmem %s40_s6, 1024  ;;  %p521_p6 = scmp.lt.s32.totalorder %s40_s6, %s40_s6 }
  0x2b   :  { %p517_p5 = scmp.ne.s32.totalorder %s40_s6, %s516_s23  ;;  %p522_p7 = scmp.lt.s32.totalorder %s516_s23, %s516_s23 }
  0x2d   :  { %p523_p8 = por %p522_p7, %p521_p6 }
  0x2f   :  { %p524_p9 = pnand %p523_p8, %p517_p5 }
  0x31   :  { %527 = shalt.err (!%p524_p9)
}
  0x32   :  { %45 = dma.hbm_to_vmem [thread:$0]  %s662_s2, 1024, %s40_s6, [#allocation6], %s557_s25, %s557_s25, %s558_s26  }
  0x33   :  { %550 = dma.done.wait [#allocation3], 128  }
  0x34   :  { %551 = vsyncadd [#allocation3], 4294967168 }
  0x35   :  { %552 = dma.done.wait [#allocation6], 2048  }
  0x36   :  { %553 = vsyncadd [#allocation6], 4294965248  ;;  %v561_v0 = vmov 0.0   ;;  %vm562_vm0 = vmmov 0   ;;  %v442_v1 = vld [vmem:[#allocation5] sm:$0xff]   ;;  %v443_v2 = vld [vmem:[#allocation5 + $0x8] sm:$0xff]   ;;  %v190_v42 = vlaneseq }
  0x37   :  { %394 = vmatprep.subr.bf16.mxu0 %v561_v0  ;;  %410 = vmatprep.mubr.msk.bf16.mxu0 %vm562_vm0, %v561_v0  ;;  %v444_v3 = vld [vmem:[#allocation5 + $0x10] sm:$0xff]   ;;  %v445_v4 = vld [vmem:[#allocation5 + $0x18] sm:$0xff]   ;;  %v446_v5 = vld [vmem:[#allocation5 + $0x20] sm:$0xff]   ;;  %s563_s6 = smov [#allocation8]  }
  0x38   :  { %414 = vmatprep.subr.bf16.mxu1 %v561_v0  ;;  %430 = vmatprep.mubr.msk.bf16.mxu1 %vm562_vm0, %v561_v0  ;;  %v447_v6 = vld [vmem:[#allocation5 + $0x28] sm:$0xff]   ;;  %v448_v7 = vld [vmem:[#allocation5 + $0x30] sm:$0xff]   ;;  %v449_v8 = vld [vmem:[#allocation5 + $0x38] sm:$0xff]   ;;  %v191_v43 = vshrl.u32 %v190_v42, 7  ;;  %s350_s7 = sshll.u32 %s563_s6, 4  ;;  %s351_s7 = int_to_ptr.vmem [resolvable:$true] %s350_s7 }
  0x39   :  { %395 = vmatpush3.bf16.msra.mxu0 %v442_v1  ;;  %v631_v9 = vld [vmem:[#allocation2] sm:$0xff]  ;;  %v450_v11 = vld [vmem:[#allocation7] sm:$0xff]   ;;  %v451_v12 = vld [vmem:[#allocation7 + $0x8] sm:$0xff]   ;;  %s528_s8 = scalar_lea.vmem %s351_s7, 128  ;;  %p533_p11 = scmp.lt.s32.totalorder %s351_s7, %s351_s7 }
  0x3a   :  { %396 = vmatprep.subr.bf16.mxu0 %v561_v0  ;;  %v59_v10 = vpack.c.bf16 %v631_v9, %v631_v9  ;;  %415 = vmatpush3.bf16.msra.mxu1 %v450_v11  ;;  %v452_v13 = vld [vmem:[#allocation7 + $0x10] sm:$0xff]   ;;  %v453_v14 = vld [vmem:[#allocation7 + $0x18] sm:$0xff]   ;;  %v454_v15 = vld [vmem:[#allocation7 + $0x20] sm:$0xff]   ;;  %v192_v45 = vsub.s32 0, %v191_v43  ;;  %p529_p10 = scmp.ne.s32.totalorder %s351_s7, %s528_s8  ;;  %p534_p12 = scmp.lt.s32.totalorder %s528_s8, %s528_s8 }
  0x3b   :  { %416 = vmatprep.subr.bf16.mxu1 %v561_v0  ;;  %v455_v16 = vld [vmem:[#allocation7 + $0x28] sm:$0xff]   ;;  %v456_v17 = vld [vmem:[#allocation7 + $0x30] sm:$0xff]   ;;  %v457_v18 = vld [vmem:[#allocation7 + $0x38] sm:$0xff]  }
  0x3c   :  { %v183_v44 = vld [vmem:[%s663_s3] sm:$0x1]  ;;  %v187_v48 = vld [vmem:[%s663_s3 + $0x1] sm:$0x1]  ;;  %p535_p13 = por %p534_p12, %p533_p11 }
  0x3d   :  { %397 = vmatpush3.bf16.msra.mxu0 %v443_v2 }
  0x3e   :  { %398 = vmatprep.subr.bf16.mxu0 %v561_v0  ;;  %417 = vmatpush3.bf16.msra.mxu1 %v451_v12  ;;  %p536_p0 = pnand %p535_p13, %p529_p10 }
  0x3f   :  { %418 = vmatprep.subr.bf16.mxu1 %v561_v0 }
  0x41   :  { %399 = vmatpush3.bf16.msra.mxu0 %v444_v3 }
  0x42   :  { %400 = vmatprep.subr.bf16.mxu0 %v561_v0  ;;  %419 = vmatpush3.bf16.msra.mxu1 %v452_v13 }
  0x43   :  { %420 = vmatprep.subr.bf16.mxu1 %v561_v0 }
  0x45   :  { %401 = vmatpush3.bf16.msra.mxu0 %v445_v4 }
  0x46   :  { %402 = vmatprep.subr.bf16.mxu0 %v561_v0  ;;  %421 = vmatpush3.bf16.msra.mxu1 %v453_v14 }
  0x47   :  { %422 = vmatprep.subr.bf16.mxu1 %v561_v0 }
  0x49   :  { %403 = vmatpush3.bf16.msra.mxu0 %v446_v5 }
  0x4a   :  { %404 = vmatprep.subr.bf16.mxu0 %v561_v0  ;;  %423 = vmatpush3.bf16.msra.mxu1 %v454_v15 }
  0x4b   :  { %424 = vmatprep.subr.bf16.mxu1 %v561_v0 }
  0x4d   :  { %405 = vmatpush3.bf16.msra.mxu0 %v447_v6 }
  0x4e   :  { %406 = vmatprep.subr.bf16.mxu0 %v561_v0  ;;  %425 = vmatpush3.bf16.msra.mxu1 %v455_v16 }
  0x4f   :  { %426 = vmatprep.subr.bf16.mxu1 %v561_v0 }
  0x51   :  { %407 = vmatpush3.bf16.msra.mxu0 %v448_v7 }
  0x52   :  { %408 = vmatprep.subr.bf16.mxu0 %v561_v0  ;;  %427 = vmatpush3.bf16.msra.mxu1 %v456_v17  ;;  %v324_v17 = vld [vmem:[%s663_s3 + $0x2] sm:$0x1] }
  0x53   :  { %428 = vmatprep.subr.bf16.mxu1 %v561_v0 }
  0x55   :  { %409 = vmatpush3.bf16.msra.mxu0 %v449_v8 }
  0x56   :  { %429 = vmatpush3.bf16.msra.mxu1 %v457_v18 }
  0x58   :  { %411 = vmatmul.mubr.bf16.vlgmr.msra.gmra.mrb[0].mxu0 %v59_v10 }
 0x12b   :  { %v158_v19 = vpop.f32.mrb[0].mxu0 }
 0x12c   :  { %v164_v20 = vrot.slane %v158_v19, 4  ;;  %v172_v21 = vmul.f32 %v158_v19, %v158_v19  ;;  %v412_v22 = vpop.f32.mrb[1].mxu0 }
 0x12d   :  { %v161_v23 = vpop.f32.mrb[2].mxu0 }
 0x12e   :  { %v165_v24 = vadd.f32 %v164_v20, %v158_v19  ;;  %v173_v25 = vrot.slane %v172_v21, 4  ;;  %v413_v26 = vpop.f32.mrb[3].mxu0  ;;  %v328_v20 = vld [vmem:[%s663_s3 + $0x3] sm:$0x1] }
 0x130   :  { %v166_v27 = vrot.slane %v165_v24, 2  ;;  %v174_v28 = vadd.f32 %v173_v25, %v172_v21 }
 0x132   :  { %v167_v29 = vadd.f32 %v166_v27, %v165_v24  ;;  %v175_v30 = vrot.slane %v174_v28, 2 }
 0x134   :  { %v168_v31 = vrot.slane %v167_v29, 1  ;;  %v176_v32 = vadd.f32 %v175_v30, %v174_v28 }
 0x136   :  { %v169_v33 = vadd.f32 %v168_v31, %v167_v29  ;;  %v177_v34 = vrot.slane %v176_v32, 1 }
 0x138   :  { %v171_v35 = vmul.f32 0.125, %v169_v33  ;;  %v178_v36 = vadd.f32 %v177_v34, %v176_v32 }
 0x13a   :  { %v179_v37 = vmul.f32 0.125, %v178_v36  ;;  %v180_v38 = vmul.f32 %v171_v35, %v171_v35 }
 0x13c   :  { %v181_v39 = vsub.f32 %v179_v37, %v180_v38 }
 0x13e   :  { %v182_v40 = vmax.f32 %v181_v39, 0.0 }
 0x140   :  { %v184_v41 = vadd.f32 1e-05, %v182_v40 }
 0x142   :  { %458 = vrsqrt.f32 %v184_v41 }
 0x14c   :  { %v459_v46 = vpop.eup %458 }
 0x14d   :  { %v186_v47 = vmul.f32 %v459_v46, %v183_v44 }
 0x14f   :  { %v193_v49 = vrot.slane %v186_v47, %v192_v45  ;;  %v188_v50 = vmul.f32 %v186_v47, %v171_v35 }
 0x151   :  { %v189_v51 = vsub.f32 %v187_v48, %v188_v50  ;;  %v194_v52 = vmul.f32 %v193_v49, %v158_v19 }
 0x153   :  { %v198_v53 = vrot.slane %v189_v51, %v192_v45 }
 0x155   :  { %v199_v54 = vadd.f32 %v198_v53, %v194_v52 }
 0x157   :  { %v200_v55 = vmax.f32 %v199_v54, 0.0 }
 0x159   :  { %v201_v56 = vpack.c.bf16 %v200_v55, %v200_v55 }
 0x15b   :  { %431 = vmatmul.mubr.bf16.vlgmr.msra.gmra.mrb[0].mxu1 %v201_v56 }
 0x22e   :  { %v300_v57 = vpop.f32.mrb[0].mxu1 }
 0x22f   :  { %v306_v58 = vrot.slane %v300_v57, 4  ;;  %v313_v59 = vmul.f32 %v300_v57, %v300_v57  ;;  %v432_v60 = vpop.f32.mrb[1].mxu1 }
 0x230   :  { %v303_v61 = vpop.f32.mrb[2].mxu1 }
 0x231   :  { %v307_v62 = vadd.f32 %v306_v58, %v300_v57  ;;  %v314_v63 = vrot.slane %v313_v59, 4  ;;  %v433_v0 = vpop.f32.mrb[3].mxu1 }
 0x233   :  { %v308_v1 = vrot.slane %v307_v62, 2  ;;  %v315_v2 = vadd.f32 %v314_v63, %v313_v59 }
 0x235   :  { %v309_v3 = vadd.f32 %v308_v1, %v307_v62  ;;  %v316_v4 = vrot.slane %v315_v2, 2 }
 0x237   :  { %v310_v5 = vrot.slane %v309_v3, 1  ;;  %v317_v6 = vadd.f32 %v316_v4, %v315_v2 }
 0x239   :  { %v311_v7 = vadd.f32 %v310_v5, %v309_v3  ;;  %v318_v8 = vrot.slane %v317_v6, 1 }
 0x23b   :  { %v312_v10 = vmul.f32 0.125, %v311_v7  ;;  %v319_v11 = vadd.f32 %v318_v8, %v317_v6 }
 0x23d   :  { %v320_v12 = vmul.f32 0.125, %v319_v11  ;;  %v321_v13 = vmul.f32 %v312_v10, %v312_v10 }
 0x23f   :  { %v322_v14 = vsub.f32 %v320_v12, %v321_v13 }
 0x241   :  { %v323_v15 = vmax.f32 %v322_v14, 0.0 }
 0x243   :  { %v325_v16 = vadd.f32 1e-05, %v323_v15 }
 0x245   :  { %460 = vrsqrt.f32 %v325_v16 }
 0x24f   :  { %v461_v18 = vpop.eup %460 }
 0x250   :  { %v327_v19 = vmul.f32 %v461_v18, %v324_v17 }
 0x252   :  { %v334_v21 = vrot.slane %v327_v19, %v192_v45  ;;  %v329_v22 = vmul.f32 %v327_v19, %v312_v10 }
 0x254   :  { %v335_v23 = vmul.f32 %v334_v21, %v300_v57  ;;  %v330_v24 = vsub.f32 %v328_v20, %v329_v22 }
 0x256   :  { %v336_v25 = vadd.f32 %v335_v23, %v631_v9  ;;  %v340_v26 = vrot.slane %v330_v24, %v192_v45 }
 0x258   :  { %v341_v27 = vadd.f32 %v340_v26, %v336_v25 }
 0x25a   :  { %v342_v28 = vmax.f32 %v341_v27, 0.0 }
 0x25c   :  { %343 = vst [vmem:[#allocation8] sm:$0xff] %v342_v28 }
 0x25d   :  { %539 = shalt.err (!%p536_p0)
}
 0x25e   :  { %s540_s10 = scalar_lea.hbm %s664_s4, 128 }
 0x25f   :  { %p541_p1 = scmp.ne.s32.totalorder %s664_s4, %s540_s10  ;;  %p544_p2 = scmp.lt.u32.totalorder %s540_s10, %s664_s4 }
 0x261   :  { %p546_p3 = pnand %p544_p2, %p541_p1 }
 0x263   :  { %549 = shalt.err (!%p546_p3)
}
 0x264   :  { %353 = dma.vmem_to_hbm [thread:$0]  %s351_s7, 128, %s664_s4, [#allocation4]  }
 0x265   :  { %554 = dma.done.wait [#allocation4], 128  }
 0x266   :  { %555 = vsyncadd [#allocation4], 4294967168 }
 0x267   :  { %357 = vsyncpa [#allocation3], 1 }
 0x268   :  { %358 = vsyncpa [#allocation6], 1 }
 0x269   :  { %359 = vsyncpa [#allocation4], 1 }

</bundles_post_ra>
